<compile_context>
chip_gen: v7x
topology: tpu7x:2x2x1
jax: 0.10.0
libtpu: 0.0.40
codegen_flags: <defaults>
</compile_context>

<pallas_src>
import functools

import jax
import jax.numpy as jnp
from jax import lax
from jax.experimental import pallas as pl
from jax.experimental.pallas import tpu as pltpu

_LANES = 128


def _dice_partial_kernel(x_ref, t_ref, isum_ref, dsum_ref, *,
                         normalization, hw, block_rows, needs_mask):
    """Grid = (N, num_row_blocks); both axes parallel (no cross-step state).

    Block views:
      x_ref, t_ref       : (C, block_rows, 128)   logits / target tile
      isum_ref, dsum_ref : (C, 128)               per-(sample, row-block) partials
    """
    x = x_ref[...].astype(jnp.float32)
    t = t_ref[...].astype(jnp.float32)

    if normalization == "sigmoid":
        # sigmoid(x) = 0.5*(tanh(x/2)+1): single EUP op, no VALU divide.
        p = 0.5 * (jnp.tanh(0.5 * x) + 1.0)
    elif normalization == "softmax":
        # nn.Softmax(dim=1) is over channels == axis 0 of the (C, rows, 128) block,
        # computed independently per (row, lane) column, so tiling H*W is safe.
        # EUP reciprocal over 1/C of the elements + one VALU mul per element.
        m = jnp.max(x, axis=0, keepdims=True)
        e = jnp.exp(x - m)
        inv = pl.reciprocal(jnp.sum(e, axis=0, keepdims=True), approx=True)
        p = e * inv
    else:  # 'none'
        p = x

    def _write(p_, t_):
        # Lane-wide partial sums: only the rows axis is reduced here; cross-lane /
        # cross-block / cross-batch reductions happen once, in the JAX finalize.
        isum_ref[...] = jnp.sum(p_ * t_, axis=1)
        dsum_ref[...] = jnp.sum(p_ * p_ + t_ * t_, axis=1)

    if needs_mask:
        # Only the LAST row-block can contain padding / out-of-bounds rows, so the
        # ~5 extra VALU ops/element of the mask are paid on one block only.
        j = pl.program_id(1)
        last_j = pl.num_programs(1) - 1

        @pl.when(j != last_j)
        def _fast():
            _write(p, t)

        @pl.when(j == last_j)
        def _tail():
            row = lax.broadcasted_iota(jnp.int32, (block_rows, _LANES), 0)
            lane = lax.broadcasted_iota(jnp.int32, (block_rows, _LANES), 1)
            flat = (j * block_rows + row) * _LANES + lane
            valid = (flat < hw)[None, :, :]
            # Keep this a select (not a multiply): OOB tail reads may be garbage.
            _write(jnp.where(valid, p, 0.0), jnp.where(valid, t, 0.0))
    else:
        _write(p, t)


def _sublane_granule(dtype):
    # Minimum second-to-last tile dim for this dtype: 8 (f32), 16 (bf16), 32 (int8).
    return max(8, 32 // jnp.dtype(dtype).itemsize)


def _choose_block_rows(c, r, granule):
    """Rows-of-128 per tile.  Budget ~1 MiB of f32 for the x tile so that the two
    double-buffered input tiles plus the full-tile f32 temporaries (x_f32, t_f32,
    p, products) stay well inside v5e's 16 MiB / v7x's 32 MiB default scoped VMEM;
    measured roofline data shows >=512-wide tiles already reach ~85% of HBM BW."""
    budget_elems = (1 << 20) // 4                    # 1 MiB of f32
    br = max(1, budget_elems // (c * _LANES))
    if br >= r:
        return r                                     # full extent: no divisibility constraint
    br = max(granule, (br // granule) * granule)
    # TODO(synk): for very large C (>512) with normalization != 'softmax', the channel
    # axis should be tiled too instead of relying on this granule floor.
    return min(br, r)


def abstract_dice_loss(input_nchw, target_nchw, normalization="sigmoid"):
    assert normalization in ("sigmoid", "softmax", "none")
    assert input_nchw.shape == target_nchw.shape
    n, c, h, w = input_nchw.shape
    hw = h * w
    hw_pad = pl.cdiv(hw, _LANES) * _LANES
    r = hw_pad // _LANES

    # Contiguous (free) reshapes only -- no transpose, no dtype up-cast in HBM.
    x = input_nchw.reshape(n, c, hw)
    t = target_nchw.reshape(n, c, hw)                # keep narrow native dtype
    if hw_pad != hw:
        # TODO(synk): this pad is an extra HBM pass, taken only when H*W % 128 != 0;
        # 128-aligned spatial shapes (the common case, incl. the demo) go straight through.
        pad = ((0, 0), (0, 0), (0, hw_pad - hw))
        x = jnp.pad(x, pad)
        t = jnp.pad(t, pad)
    x = x.reshape(n, c, r, _LANES)
    t = t.reshape(n, c, r, _LANES)

    granule = max(_sublane_granule(x.dtype), _sublane_granule(t.dtype))
    block_rows = _choose_block_rows(c, r, granule)
    num_j = pl.cdiv(r, block_rows)
    needs_mask = (hw % (block_rows * _LANES)) != 0

    kernel = functools.partial(
        _dice_partial_kernel,
        normalization=normalization,
        hw=hw,
        block_rows=block_rows,
        needs_mask=needs_mask,
    )

    n_elems = n * c * hw
    cost = pl.CostEstimate(
        flops=10 * n_elems,
        transcendentals=(0 if normalization == "none" else n_elems),
        bytes_accessed=int(x.size * x.dtype.itemsize
                           + t.size * t.dtype.itemsize
                           + 2 * n * num_j * c * _LANES * 4),
    )

    isum, dsum = pl.pallas_call(
        kernel,
        out_shape=(
            jax.ShapeDtypeStruct((n, num_j, c, _LANES), jnp.float32),
            jax.ShapeDtypeStruct((n, num_j, c, _LANES), jnp.float32),
        ),
        grid=(n, num_j),
        in_specs=[
            pl.BlockSpec((None, c, block_rows, _LANES), lambda i, j: (i, 0, j, 0)),
            pl.BlockSpec((None, c, block_rows, _LANES), lambda i, j: (i, 0, j, 0)),
        ],
        out_specs=(
            pl.BlockSpec((None, None, c, _LANES), lambda i, j: (i, j, 0, 0)),
            pl.BlockSpec((None, None, c, _LANES), lambda i, j: (i, j, 0, 0)),
        ),
        compiler_params=pltpu.CompilerParams(
            # Per-(i, j) partial outputs -> no cross-step accumulator -> both grid
            # axes parallel (shardable across the 2 TensorCores on v7x even for N=1-2).
            dimension_semantics=("parallel", "parallel"),
            vmem_limit_bytes=32 * 1024 * 1024,
        ),
        cost_estimate=cost,
    )(x, t)

    # Tiny finalize in plain JAX (cross-lane / cross-block / cross-batch reductions).
    intersect = jnp.sum(isum, axis=(0, 1, 3))              # (C,)
    denom = jnp.sum(dsum, axis=(0, 1, 3))                  # (C,)
    dice = 2.0 * intersect / jnp.maximum(denom, 1e-6)      # clamp(min=1e-6)
    # TODO(synk): `dice()` is abstract in _AbstractDiceLoss; this is the canonical
    # per-channel Dice of its concrete subclasses; `weight` buffer defaults to None.
    return 1.0 - jnp.mean(dice)


def _reference_dice_loss(input_nchw, target_nchw, normalization="sigmoid"):
    n, c, h, w = input_nchw.shape
    x = jnp.transpose(input_nchw, (1, 0, 2, 3)).reshape(c, -1)
    t = jnp.transpose(target_nchw, (1, 0, 2, 3)).reshape(c, -1).astype(jnp.float32)
    if normalization == "sigmoid":
        p = jax.nn.sigmoid(x)
    elif normalization == "softmax":
        p = jax.nn.softmax(x, axis=0)
    else:
        p = x
    intersect = jnp.sum(p * t, axis=-1)
    denom = jnp.sum(p * p, axis=-1) + jnp.sum(t * t, axis=-1)
    dice = 2.0 * intersect / jnp.maximum(denom, 1e-6)
    return 1.0 - jnp.mean(dice)


if __name__ == "__main__":
    key = jax.random.PRNGKey(0)
    kx, kt = jax.random.split(key)

    # NCHW, matching the PyTorch module's expected input layout.
    shape = (2, 4, 16, 16)
    x = jax.random.normal(kx, shape, dtype=jnp.float32)
    # Target shipped in a narrow dtype (bf16): half the read bytes of f32.
    target = jax.random.bernoulli(kt, p=0.5, shape=shape).astype(jnp.bfloat16)

    loss = abstract_dice_loss(x, target, normalization="sigmoid")
    loss = jax.block_until_ready(loss)

    ref = _reference_dice_loss(x, target, normalization="sigmoid")
    assert jnp.allclose(loss, ref, atol=1e-4, rtol=1e-4), (loss, ref)

    print("KERNEL_OK")
</pallas_src>

<mosaic_0001>
module attributes {stable_mosaic.version = 11 : i64} {
  func.func @_dice_partial_kernel(%arg0: i32, %arg1: i32, %arg2: memref<1x4x2x128xf32, #tpu.memory_space<vmem>>, %arg3: memref<1x4x2x128xbf16, #tpu.memory_space<vmem>>, %arg4: memref<1x1x4x128xf32, #tpu.memory_space<vmem>>, %arg5: memref<1x1x4x128xf32, #tpu.memory_space<vmem>>) attributes {dimension_semantics = [#tpu.dimension_semantics<parallel>, #tpu.dimension_semantics<parallel>], iteration_bounds = array<i64: 2, 1>, scalar_prefetch = 0 : i64, scratch_operands = 0 : i64, tpu.core_type = #tpu.core_type<tc>, window_params = [{transform_indices = @transform_0, window_bounds = array<i64: 1, 4, 2, 128>}, {transform_indices = @transform_1, window_bounds = array<i64: 1, 4, 2, 128>}, {transform_indices = @transform_2, window_bounds = array<i64: 1, 1, 4, 128>}, {transform_indices = @transform_3, window_bounds = array<i64: 1, 1, 4, 128>}]} {
    %c0 = arith.constant 0 : index
    %c0_0 = arith.constant 0 : index
    %c0_1 = arith.constant 0 : index
    %c0_2 = arith.constant 0 : index
    %0 = vector.load %arg2[%c0, %c0_0, %c0_1, %c0_2] : memref<1x4x2x128xf32, #tpu.memory_space<vmem>>, vector<1x4x2x128xf32>
    %1 = vector.shape_cast %0 : vector<1x4x2x128xf32> to vector<4x2x128xf32>
    %c0_3 = arith.constant 0 : index
    %c0_4 = arith.constant 0 : index
    %c0_5 = arith.constant 0 : index
    %c0_6 = arith.constant 0 : index
    %2 = vector.load %arg3[%c0_3, %c0_4, %c0_5, %c0_6] : memref<1x4x2x128xbf16, #tpu.memory_space<vmem>>, vector<1x4x2x128xbf16>
    %3 = vector.shape_cast %2 : vector<1x4x2x128xbf16> to vector<4x2x128xbf16>
    %4 = arith.extf %3 : vector<4x2x128xbf16> to vector<4x2x128xf32>
    %cst = arith.constant 5.000000e-01 : f32
    %5 = vector.broadcast %cst : f32 to vector<4x2x128xf32>
    %6 = arith.mulf %5, %1 : vector<4x2x128xf32>
    %7 = math.tanh %6 : vector<4x2x128xf32>
    %cst_7 = arith.constant 1.000000e+00 : f32
    %8 = vector.broadcast %cst_7 : f32 to vector<4x2x128xf32>
    %9 = arith.addf %7, %8 : vector<4x2x128xf32>
    %cst_8 = arith.constant 5.000000e-01 : f32
    %10 = vector.broadcast %cst_8 : f32 to vector<4x2x128xf32>
    %11 = arith.mulf %10, %9 : vector<4x2x128xf32>
    %12 = arith.mulf %11, %4 : vector<4x2x128xf32>
    %cst_9 = arith.constant dense<0.000000e+00> : vector<4x128xf32>
    %13 = vector.multi_reduction <add>, %12, %cst_9 [1] : vector<4x2x128xf32> to vector<4x128xf32>
    %c0_10 = arith.constant 0 : index
    %c0_11 = arith.constant 0 : index
    %c0_12 = arith.constant 0 : index
    %c0_13 = arith.constant 0 : index
    %14 = vector.load %arg4[%c0_10, %c0_11, %c0_12, %c0_13] : memref<1x1x4x128xf32, #tpu.memory_space<vmem>>, vector<1x1x4x128xf32>
    %15 = vector.shape_cast %14 : vector<1x1x4x128xf32> to vector<4x128xf32>
    %16 = vector.shape_cast %13 : vector<4x128xf32> to vector<1x1x4x128xf32>
    tpu.vector_store %arg4[%c0_10, %c0_11, %c0_12, %c0_13], %16 {strides = array<i32>} : memref<1x1x4x128xf32, #tpu.memory_space<vmem>>, vector<1x1x4x128xf32>,
    %17 = arith.mulf %11, %11 : vector<4x2x128xf32>
    %18 = arith.mulf %4, %4 : vector<4x2x128xf32>
    %19 = arith.addf %17, %18 : vector<4x2x128xf32>
    %cst_14 = arith.constant dense<0.000000e+00> : vector<4x128xf32>
    %20 = vector.multi_reduction <add>, %19, %cst_14 [1] : vector<4x2x128xf32> to vector<4x128xf32>
    %c0_15 = arith.constant 0 : index
    %c0_16 = arith.constant 0 : index
    %c0_17 = arith.constant 0 : index
    %c0_18 = arith.constant 0 : index
    %21 = vector.load %arg5[%c0_15, %c0_16, %c0_17, %c0_18] : memref<1x1x4x128xf32, #tpu.memory_space<vmem>>, vector<1x1x4x128xf32>
    %22 = vector.shape_cast %21 : vector<1x1x4x128xf32> to vector<4x128xf32>
    %23 = vector.shape_cast %20 : vector<4x128xf32> to vector<1x1x4x128xf32>
    tpu.vector_store %arg5[%c0_15, %c0_16, %c0_17, %c0_18], %23 {strides = array<i32>} : memref<1x1x4x128xf32, #tpu.memory_space<vmem>>, vector<1x1x4x128xf32>,
    return
  }
  func.func @transform_0(%arg0: i32, %arg1: i32) -> (i32, i32, i32, i32) {
    %c0_i32 = arith.constant 0 : i32
    %c0_i32_0 = arith.constant 0 : i32
    %c0_i32_1 = arith.constant 0 : i32
    return %arg0, %c0_i32, %arg1, %c0_i32_0 : i32, i32, i32, i32
  }
  func.func @transform_1(%arg0: i32, %arg1: i32) -> (i32, i32, i32, i32) {
    %c0_i32 = arith.constant 0 : i32
    %c0_i32_0 = arith.constant 0 : i32
    %c0_i32_1 = arith.constant 0 : i32
    return %arg0, %c0_i32, %arg1, %c0_i32_0 : i32, i32, i32, i32
  }
  func.func @transform_2(%arg0: i32, %arg1: i32) -> (i32, i32, i32, i32) {
    %c0_i32 = arith.constant 0 : i32
    %c0_i32_0 = arith.constant 0 : i32
    %c0_i32_1 = arith.constant 0 : i32
    return %arg0, %arg1, %c0_i32, %c0_i32_0 : i32, i32, i32, i32
  }
  func.func @transform_3(%arg0: i32, %arg1: i32) -> (i32, i32, i32, i32) {
    %c0_i32 = arith.constant 0 : i32
    %c0_i32_0 = arith.constant 0 : i32
    %c0_i32_1 = arith.constant 0 : i32
    return %arg0, %arg1, %c0_i32, %c0_i32_0 : i32, i32, i32, i32
  }
}

</mosaic_0001>

<bundles_post_ra>
// kernel: tpu_custom_call.1
= control target key start
LH: loop header
LB: loop body
LE: loop exit
PB: predicated region body
PF: predicated region fallthrough
CT: control target
= control target key end

     0   :  { %9 = vsyncpa [#allocation3], 0  ;;  %s1154_s0 = inlined_call_operand.hbm [shape: f32[2,4,2,128], index: 0, kind: input, shape index: {}]   ;;  %s1155_s1 = inlined_call_operand.hbm [shape: bf16[2,4,2,128], index: 1, kind: input, shape index: {}]   ;;  %s1156_s2 = inlined_call_operand.hbm [shape: f32[2,1,4,128], index: 2, kind: output, shape index: {0}]   ;;  %s1157_s3 = inlined_call_operand.hbm [shape: f32[2,1,4,128], index: 3, kind: output, shape index: {1}]  }
   0x1   :  { %11 = vsyncpa [#allocation3 + $0x1], 0 }
   0x2   :  { %12 = vsyncpa [#allocation6], 0 }
   0x3   :  { %14 = vsyncpa [#allocation6 + $0x1], 0 }
   0x4   :  { %15 = vsyncpa [#allocation4], 0 }
   0x5   :  { %17 = vsyncpa [#allocation4 + $0x1], 0 }
   0x6   :  { %18 = vsyncpa [#allocation9], 0 }
   0x7   :  { %20 = vsyncpa [#allocation9 + $0x1], 0  ;;  %s872_s12 = smov 0   ;;  %s874_s13 = smov 0  }
   0x8   :  { %s876_s14 = smov 0   ;;  %s878_s15 = smov 0  }
   0x9   :  { %s880_s16 = smov 0   ;;  %s882_s17 = smov 0  }
   0xa LB: > { %s557_s18 = sadd.s32 4294967295, %s842_s17   ;;  %s558_s19 = sadd.s32 4294967294, %s842_s17   ;;  %s842_s17 = sphi %s882_s17, %s26_s17   ;;  %s838_s16 = sphi %s880_s16, %s1175_s16   ;;  %s834_s15 = sphi %s878_s15, %s1174_s15   ;;  %s830_s14 = sphi %s876_s14, %s1173_s14   ;;  %s826_s13 = sphi %s874_s13, %s1172_s13   ;;  %s822_s12 = sphi %s872_s12, %s1171_s12  }
   0xb   : > { %s38_s20 = sadd.s32 1, %s838_s16  ;;  %s47_s21 = sadd.s32 1, %s830_s14 }
   0xc   : > { %p40_p0 = scmp.ge.s32.totalorder %s38_s20, 2  ;;  %p54_p1 = scmp.ne.s32.totalorder %s830_s14, %s826_s13 }
   0xd   : > { %p55_p2 = scmp.eq.s32.totalorder %s842_s17, 0  ;;  %p60_p3 = scmp.ne.s32.totalorder %s826_s13, %s822_s12 }
   0xe   : > { %s1177_s20 = smov (%p40_p0, %s38_s20), 0  ;;  %p61_p5 = scmp.eq.s32.totalorder %s557_s18, 0 }
   0xf   : > { %p913_p4 = por %p55_p2, %p54_p1  ;;  %s42_s23 = ssub.s32 %s838_s16, %s1177_s20 }
  0x10   : > { %p114_p6 = scmp.eq.s32.totalorder %s557_s18, 1  ;;  %p45_p7 = scmp.eq.s32.totalorder %s42_s23, 0 }
  0x11   : > { %p919_p8 = por %p61_p5, %p60_p3  ;;  %p120_p10 = scmp.eq.s32.totalorder %s558_s19, 1 }
  0x12   : > { %p923_p9 = por %p114_p6, %p54_p1  ;;  %p602_p13 = scmp.lt.s32.totalorder %s842_s17, 2 }
  0x13   : > { %s1161_s24 = scalar_select %p919_p8, 1, 0 }
  0x14   : > { %s1162_s25 = scalar_select %p923_p9, 1, 0 }
  0x15   : > { %s928_s26 = scalar_select %p45_p7, %s830_s14, %s47_s21  }
  0x16   : > { %p930_p11 = por %p120_p10, %p60_p3  ;;  %s937_s28 = sand.u32 1, %s830_s14  }
  0x17   : > { %s561_s29 = sshll.u32 %s937_s28, 3  ;;  %s578_s30 = sshll.u32 %s838_s16, 7 }
  0x18   : > { %s1163_s27 = scalar_select %p930_p11, 1, 0 }
  0x19   : > { %s944_s6 = scalar_lea.hbm %s1154_s0, %s578_s30  ;;  %s172_s7 = scalar_lea.vmem [#allocation2], %s561_s29 }
  0x1a   : > { %s180_s8 = sshll.u32 %s172_s7, 4  ;;  %p950_p0 = pnand %p602_p13, %p913_p4  ;;  %s946_s8 = int_to_ptr.vmem [resolvable:$true] %s180_s8 }
  0x1b   : > { %s169_s10 = scalar_lea.sflag [#allocation3], %s937_s28  ;;  %s664_s11 = scalar_lea.hbm %s944_s6, 128 }
  0x1c   : > { %p665_p2 = scmp.ne.s32.totalorder %s944_s6, %s664_s11  ;;  %p666_p3 = pneg %p950_p0 }
  0x1d   : > { %s669_s21 = scalar_lea.hbm %s1154_s0, 256  ;;  %p670_p4 = scmp.lt.u32.totalorder %s944_s6, %s1154_s0 }
  0x1e   : > { %p667_p5 = pnand %p666_p3, %p665_p2  ;;  %p671_p7 = scmp.lt.u32.totalorder %s669_s21, %s664_s11 }
  0x1f   : > { %p673_p13 = scmp.lt.u32.totalorder %s664_s11, %s944_s6 }
  0x20   : > { %p668_p6 = pneg %p667_p5  ;;  %p672_p10 = por %p671_p7, %p670_p4 }
  0x22   : > { %p674_p12 = por %p673_p13, %p672_p10 }
  0x24   : > { %p675_p1 = pnand %p674_p12, %p668_p6 }
  0x26   : > { %678 = shalt.err (!%p675_p1)
}
  0x27   : > { %s679_s29 = scalar_lea.vmem %s946_s8, 128  ;;  %s844_s30 = smov [#allocation2]  }
  0x28   : > { %p680_p2 = scmp.ne.s32.totalorder %s946_s8, %s679_s29  ;;  %s684_s4 = sshll.u32 %s844_s30, 4  ;;  %s685_s4 = int_to_ptr.vmem [resolvable:$false] %s684_s4 }
  0x29   : > { %s686_s5 = scalar_lea.vmem %s685_s4, 256  ;;  %p687_p9 = scmp.lt.s32.totalorder %s946_s8, %s685_s4 }
  0x2a   : > { %p682_p5 = pnand %p680_p2, %p666_p3  ;;  %p688_p4 = scmp.lt.s32.totalorder %s686_s5, %s679_s29 }
  0x2c   : > { %p683_p11 = pneg %p682_p5  ;;  %p689_p7 = por %p688_p4, %p687_p9 }
  0x2e   : > { %p690_p10 = pnand %p689_p7, %p683_p11 }
  0x30   : > { %693 = shalt.err (!%p690_p10)
}
  0x31   : > { %s845_s7 = smov 32   ;;  %s846_s11 = smov 2  }
  0x32   : > { %591 = dma.hbm_to_vmem [thread:$0]  (!%p950_p0), %s944_s6, 128, %s946_s8, %s169_s10, %s845_s7, %s845_s7, %s846_s11  }
  0x33   : > { %p210_p12 = scmp.lt.s32.totalorder %s842_s17, 3  ;;  %s564_s18 = sshll.u32 %s937_s28, 2 }
  0x34   : > { %s579_s19 = sshll.u32 %s838_s16, 6  ;;  %p1165_p9 = scmp.ge.s32.totalorder %s842_s17, 1 }
  0x35   : > { %s995_s29 = scalar_lea.hbm %s1155_s1, %s579_s19  ;;  %s194_s30 = scalar_lea.vmem [#allocation5], %s564_s18 }
  0x36   : > { %p988_p11 = pnand %p1165_p9, %p210_p12  ;;  %s202_s4 = sshll.u32 %s194_s30, 4  ;;  %s997_s4 = int_to_ptr.vmem [resolvable:$true] %s202_s4 }
  0x37   : > { %s191_s6 = scalar_lea.sflag [#allocation6], %s937_s28  ;;  %s694_s8 = scalar_lea.hbm %s995_s29, 64 }
  0x38   : > { %p695_p1 = scmp.ne.s32.totalorder %s995_s29, %s694_s8  ;;  %s699_s7 = scalar_lea.hbm %s1155_s1, 128 }
  0x39   : > { %p700_p2 = scmp.lt.u32.totalorder %s995_s29, %s1155_s1  ;;  %p701_p5 = scmp.lt.u32.totalorder %s699_s7, %s694_s8 }
  0x3a   : > { %p697_p6 = pnand %p695_p1, %p666_p3  ;;  %p703_p7 = scmp.lt.u32.totalorder %s694_s8, %s995_s29 }
  0x3b   : > { %p702_p4 = por %p701_p5, %p700_p2 }
  0x3c   : > { %p698_p13 = pneg %p697_p6 }
  0x3d   : > { %p704_p10 = por %p703_p7, %p702_p4 }
  0x3f   : > { %p705_p12 = pnand %p704_p10, %p698_p13 }
  0x41   : > { %708 = shalt.err (!%p705_p12)
}
  0x42   : > { %s709_s18 = scalar_lea.vmem %s997_s4, 64  ;;  %s847_s22 = smov [#allocation5]  }
  0x43   : > { %p710_p9 = scmp.ne.s32.totalorder %s997_s4, %s709_s18  ;;  %s714_s23 = sshll.u32 %s847_s22, 4  ;;  %s715_s23 = int_to_ptr.vmem [resolvable:$false] %s714_s23 }
  0x44   : > { %s716_s30 = scalar_lea.vmem %s715_s23, 128  ;;  %p717_p8 = scmp.lt.s32.totalorder %s997_s4, %s715_s23 }
  0x45   : > { %p712_p1 = pnand %p710_p9, %p666_p3  ;;  %p718_p2 = scmp.lt.s32.totalorder %s716_s30, %s709_s18 }
  0x47   : > { %p713_p6 = pneg %p712_p1  ;;  %p719_p5 = por %p718_p2, %p717_p8 }
  0x49   : > { %p720_p4 = pnand %p719_p5, %p713_p6 }
  0x4b   : > { %723 = shalt.err (!%p720_p4)
}
  0x4c   : > { %s848_s8 = smov 16   ;;  %s849_s10 = smov 1  }
  0x4d   : > { %594 = dma.hbm_to_vmem [thread:$0]  (!%p950_p0), %s995_s29, 64, %s997_s4, %s191_s6, %s848_s8, %s848_s8, %s849_s10  }
  0x4e   : > { %214 = sbr.rel (%p988_p11) target bundleno = 164 (0xa4), region = 28  ;;  %s1028_s5 = sand.u32 (!%p988_p11), 1, %s826_s13  }
  0x4f   : > { %s568_s7 = sshll.u32 (!%p988_p11), %s1028_s5, 3  ;;  %s217_s11 = scalar_lea.sflag (!%p988_p11), [#allocation3], %s1028_s5 }
  0x50   : > { %s220_s19 = scalar_lea.vmem (!%p988_p11), [#allocation2], %s568_s7  ;;  %p1167_p8 = scmp.ne.s32.totalorder (!%p988_p11), %s1161_s24, 0 }
  0x55   : > { %805 = dma.done.wait (%p1167_p8), %s217_s11, 128  }
  0x56   : > { %807 = vsyncadd (%p1167_p8), %s217_s11, 4294967168  ;;  %s1037_s28 = sshll.u32 %s1028_s5, 2  ;;  %s226_s9 = scalar_lea.sflag [#allocation6], %s1028_s5 }
  0x57   : > { %s229_s21 = scalar_lea.vmem [#allocation5], %s1037_s28 }
  0x58   : > { %809 = dma.done.wait (%p1167_p8), %s226_s9, 64  }
  0x59   : > { %811 = vsyncadd (%p1167_p8), %s226_s9, 4294967232  ;;  %v262_v0 = vld [vmem:[%s220_s19] sm:$0x3]  ;;  %v263_v1 = vld [vmem:[%s220_s19 + $0x2] sm:$0x3]  ;;  %vm294_vm0 = vcmask 1041408  }
  0x5a   : > { %v264_v2 = vld [vmem:[%s220_s19 + $0x4] sm:$0x3]  ;;  %v265_v3 = vld [vmem:[%s220_s19 + $0x6] sm:$0x3]  ;;  %v274_v4 = vmul.f32 0.5, %v262_v0  ;;  %v275_v5 = vmul.f32 0.5, %v263_v1 }
  0x5b   : > { %v276_v6 = vmul.f32 0.5, %v264_v2  ;;  %v277_v7 = vmul.f32 0.5, %v265_v3  ;;  %v266_v8 = vld [vmem:[%s229_s21] sm:$0x1]  ;;  %v267_v9 = vld [vmem:[%s229_s21 + $0x1] sm:$0x1] }
  0x5c   : > { %656 = vtanh.f32 %v274_v4  ;;  %v268_v10 = vld [vmem:[%s229_s21 + $0x2] sm:$0x1]  ;;  %v269_v11 = vld [vmem:[%s229_s21 + $0x3] sm:$0x1]  ;;  %v270_v12 = vunpack.c.l.bf16 %v266_v8  ;;  %v271_v14 = vunpack.c.l.bf16 %v267_v9  ;;  %vm327_vm1 = vcmask 1041409   ;;  %s254_s24 = scalar_lea.vmem [#allocation7], %s1037_s28 }
  0x5d   : > { %658 = vtanh.f32 %v275_v5  ;;  %v272_v16 = vunpack.c.l.bf16 %v268_v10  ;;  %v273_v19 = vunpack.c.l.bf16 %v269_v11  ;;  %vm329_vm2 = vcmask 1042434   ;;  %s404_s29 = sshll.u32 %s254_s24, 4  ;;  %s574_s4 = sshll.u32 %s834_s15, 6  ;;  %s1056_s29 = int_to_ptr.vmem [resolvable:$true] %s404_s29 }
  0x5e   : > { %660 = vtanh.f32 %v276_v6  ;;  %v339_v24 = vmul.f32 %v270_v12, %v270_v12  ;;  %v340_v27 = vmul.f32 %v271_v14, %v271_v14  ;;  %vm331_vm3 = vcmask 1043459   ;;  %s1064_s22 = scalar_lea.hbm %s1156_s2, %s574_s4  ;;  %s261_s23 = scalar_lea.vmem [#allocation8], %s1037_s28 }
  0x5f   : > { %662 = vtanh.f32 %v277_v7  ;;  %v341_v31 = vmul.f32 %v272_v16, %v272_v16  ;;  %v342_v35 = vmul.f32 %v273_v19, %v273_v19  ;;  %s1070_s30 = sshll.u32 %s261_s23, 4  ;;  %s385_s8 = scalar_lea.sflag [#allocation4], %s1028_s5  ;;  %s1096_s30 = int_to_ptr.vmem [resolvable:$true] %s1070_s30 }
  0x60   : > { %s724_s10 = scalar_lea.vmem %s1056_s29, 64  ;;  %p1168_p3 = scmp.ne.s32.totalorder %s1162_s25, 0 }
  0x61   : > { %p725_p0 = scmp.ne.s32.totalorder %s1056_s29, %s724_s10  ;;  %s850_s7 = smov [#allocation7]  }
  0x62   : > { %s728_s11 = sshll.u32 %s850_s7, 4  ;;  %s729_s11 = int_to_ptr.vmem [resolvable:$false] %s728_s11 }
  0x63   : > { %p726_p11 = pnand %p725_p0, %p1168_p3  ;;  %s730_s19 = scalar_lea.vmem %s729_s11, 128 }
  0x64   : > { %p731_p7 = scmp.lt.s32.totalorder %s1056_s29, %s729_s11  ;;  %p732_p10 = scmp.lt.s32.totalorder %s730_s19, %s724_s10 }
  0x65   : > { %p727_p13 = pneg %p726_p11 }
  0x66   : > { %v657_v13 = vpop.eup %656  ;;  %p733_p12 = por %p732_p10, %p731_p7 }
  0x67   : > { %v659_v15 = vpop.eup %658  ;;  %v282_v17 = vadd.f32 1.0, %v657_v13 }
  0x68   : > { %v661_v18 = vpop.eup %660  ;;  %v283_v20 = vadd.f32 1.0, %v659_v15  ;;  %p734_p9 = pnand %p733_p12, %p727_p13 }
  0x69   : > { %v663_v21 = vpop.eup %662  ;;  %v284_v22 = vadd.f32 1.0, %v661_v18  ;;  %v286_v23 = vmul.f32 0.5, %v282_v17 }
  0x6a   : > { %v285_v25 = vadd.f32 1.0, %v663_v21  ;;  %v287_v26 = vmul.f32 0.5, %v283_v20 }
  0x6b   : > { %v288_v28 = vmul.f32 0.5, %v284_v22  ;;  %v290_v29 = vmul.f32 %v286_v23, %v270_v12  ;;  %v335_v30 = vmul.f32 %v286_v23, %v286_v23 }
  0x6c   : > { %v289_v32 = vmul.f32 0.5, %v285_v25  ;;  %v291_v33 = vmul.f32 %v287_v26, %v271_v14  ;;  %v336_v34 = vmul.f32 %v287_v26, %v287_v26 }
  0x6d   : > { %v292_v36 = vmul.f32 %v288_v28, %v272_v16  ;;  %v295_v37 = vsel %vm294_vm0, %v290_v29, 0.0  ;;  %v337_v38 = vmul.f32 %v288_v28, %v288_v28  ;;  %v343_v39 = vadd.f32 %v339_v24, %v335_v30 }
  0x6e   : > { %v293_v40 = vmul.f32 %v289_v32, %v273_v19  ;;  %v296_v41 = vrot.slane %v295_v37, 4  ;;  %v302_v42 = vsel %vm294_vm0, %v291_v33, 0.0  ;;  %v338_v43 = vmul.f32 %v289_v32, %v289_v32 }
  0x6f   : > { %v303_v44 = vrot.slane %v302_v42, 4  ;;  %v309_v45 = vsel %vm294_vm0, %v292_v36, 0.0  ;;  %v344_v46 = vadd.f32 %v340_v27, %v336_v34  ;;  %v345_v47 = vadd.f32 %v341_v31, %v337_v38 }
  0x70   : > { %v297_v48 = vadd.f32 %v296_v41, %v295_v37  ;;  %v310_v49 = vrot.slane %v309_v45, 4  ;;  %v316_v50 = vsel %vm294_vm0, %v293_v40, 0.0  ;;  %v346_v51 = vadd.f32 %v342_v35, %v338_v43 }
  0x71   : > { %v304_v52 = vadd.f32 %v303_v44, %v302_v42  ;;  %v317_v53 = vrot.slane %v316_v50, 4  ;;  %v347_v54 = vsel %vm294_vm0, %v343_v39, 0.0  ;;  %v354_v55 = vsel %vm294_vm0, %v344_v46, 0.0 }
  0x72   : > { %v298_v56 = vrot.slane %v297_v48, 2  ;;  %v311_v57 = vadd.f32 %v310_v49, %v309_v45  ;;  %v348_v58 = vrot.slane %v347_v54, 4  ;;  %v355_v59 = vrot.slane %v354_v55, 4 }
  0x73   : > { %v305_v60 = vrot.slane %v304_v52, 2  ;;  %v318_v61 = vadd.f32 %v317_v53, %v316_v50  ;;  %v361_v62 = vsel %vm294_vm0, %v345_v47, 0.0  ;;  %v368_v63 = vsel %vm294_vm0, %v346_v51, 0.0 }
  0x74   : > { %v299_v0 = vadd.f32 %v298_v56, %v297_v48  ;;  %v312_v1 = vrot.slane %v311_v57, 2  ;;  %v349_v2 = vadd.f32 %v348_v58, %v347_v54  ;;  %v356_v3 = vadd.f32 %v355_v59, %v354_v55 }
  0x75   : > { %v306_v4 = vadd.f32 %v305_v60, %v304_v52  ;;  %v319_v5 = vrot.slane %v318_v61, 2  ;;  %v362_v6 = vrot.slane %v361_v62, 4  ;;  %v369_v7 = vrot.slane %v368_v63, 4 }
  0x76   : > { %v300_v8 = vrot.slane %v299_v0, 1  ;;  %v313_v9 = vadd.f32 %v312_v1, %v311_v57  ;;  %v350_v10 = vrot.slane %v349_v2, 2  ;;  %v357_v11 = vrot.slane %v356_v3, 2 }
  0x77   : > { %v307_v12 = vrot.slane %v306_v4, 1  ;;  %v320_v13 = vadd.f32 %v319_v5, %v318_v61  ;;  %v363_v14 = vadd.f32 %v362_v6, %v361_v62  ;;  %v370_v15 = vadd.f32 %v369_v7, %v368_v63 }
  0x78   : > { %v301_v16 = vadd.f32 %v300_v8, %v299_v0  ;;  %v314_v17 = vrot.slane %v313_v9, 1  ;;  %v351_v18 = vadd.f32 %v350_v10, %v349_v2  ;;  %v358_v19 = vadd.f32 %v357_v11, %v356_v3 }
  0x79   : > { %v308_v20 = vadd.f32 %v307_v12, %v306_v4  ;;  %v321_v21 = vrot.slane %v320_v13, 1  ;;  %v364_v22 = vrot.slane %v363_v14, 2  ;;  %v371_v23 = vrot.slane %v370_v15, 2 }
  0x7a   : > { %v315_v24 = vadd.f32 %v314_v17, %v313_v9  ;;  %v352_v25 = vrot.slane %v351_v18, 1  ;;  %v359_v26 = vrot.slane %v358_v19, 1 }
  0x7b   : > { %v322_v27 = vadd.f32 %v321_v21, %v320_v13  ;;  %v328_v28 = vsel %vm327_vm1, %v308_v20, %v301_v16  ;;  %v365_v29 = vadd.f32 %v364_v22, %v363_v14  ;;  %v372_v30 = vadd.f32 %v371_v23, %v370_v15 }
  0x7c   : > { %v330_v31 = vsel %vm329_vm2, %v315_v24, %v328_v28  ;;  %v353_v32 = vadd.f32 %v352_v25, %v351_v18  ;;  %v360_v33 = vadd.f32 %v359_v26, %v358_v19 }
  0x7d   : > { %v332_v34 = vsel %vm331_vm3, %v322_v27, %v330_v31  ;;  %v366_v35 = vrot.slane %v365_v29, 1  ;;  %v373_v36 = vrot.slane %v372_v30, 1 }
  0x7e   : > { %334 = vst [vmem:[%s254_s24] sm:$0xf] %v332_v34  ;;  %v379_v37 = vsel %vm327_vm1, %v360_v33, %v353_v32 }
  0x7f   : > { %v367_v38 = vadd.f32 %v366_v35, %v365_v29  ;;  %v374_v39 = vadd.f32 %v373_v36, %v372_v30 }
  0x80   : > { %737 = shalt.err (!%p734_p9)
}
  0x81   : > { %s738_s9 = scalar_lea.hbm %s1064_s22, 64  ;;  %s742_s6 = scalar_lea.hbm %s1156_s2, 128 }
  0x82   : > { %p739_p1 = scmp.ne.s32.totalorder %s1064_s22, %s738_s9  ;;  %p743_p5 = scmp.lt.u32.totalorder %s1064_s22, %s1156_s2 }
  0x83   : > { %p744_p4 = scmp.lt.u32.totalorder %s742_s6, %s738_s9  ;;  %p746_p0 = scmp.lt.u32.totalorder %s738_s9, %s1064_s22 }
  0x84   : > { %p740_p6 = pnand %p739_p1, %p1168_p3 }
  0x85   : > { %p745_p8 = por %p744_p4, %p743_p5 }
  0x86   : > { %p741_p2 = pneg %p740_p6 }
  0x87   : > { %p747_p11 = por %p746_p0, %p745_p8 }
  0x89   : > { %p748_p13 = pnand %p747_p11, %p741_p2 }
  0x8b   : > { %751 = shalt.err (!%p748_p13)
}
  0x8c   : > { %584 = dma.vmem_to_hbm [thread:$0]  (%p1168_p3), %s1056_s29, 64, %s1064_s22, %s385_s8   ;;  %v380_v40 = vsel %vm329_vm2, %v367_v38, %v379_v37 }
  0x8d   : > { %s1104_s19 = scalar_lea.hbm %s1157_s3, %s574_s4  ;;  %v381_v41 = vsel %vm331_vm3, %v374_v39, %v380_v40  ;;  %s390_s9 = scalar_lea.sflag [#allocation9], %s1028_s5 }
  0x8e   : > { %383 = vst [vmem:[%s261_s23] sm:$0xf] %v381_v41  ;;  %s752_s21 = scalar_lea.vmem %s1096_s30, 64  ;;  %s851_s29 = smov [#allocation8]  }
  0x8f   : > { %p753_p7 = scmp.ne.s32.totalorder %s1096_s30, %s752_s21  ;;  %s756_s22 = sshll.u32 %s851_s29, 4  ;;  %s757_s22 = int_to_ptr.vmem [resolvable:$false] %s756_s22 }
  0x90   : > { %s758_s8 = scalar_lea.vmem %s757_s22, 128  ;;  %p759_p9 = scmp.lt.s32.totalorder %s1096_s30, %s757_s22 }
  0x91   : > { %p754_p10 = pnand %p753_p7, %p1168_p3  ;;  %p760_p1 = scmp.lt.s32.totalorder %s758_s8, %s752_s21 }
  0x93   : > { %p755_p12 = pneg %p754_p10  ;;  %p761_p6 = por %p760_p1, %p759_p9 }
  0x95   : > { %p762_p2 = pnand %p761_p6, %p755_p12 }
  0x97   : > { %765 = shalt.err (!%p762_p2)
}
  0x98   : > { %s766_s15 = scalar_lea.hbm %s1104_s19, 64  ;;  %s770_s4 = scalar_lea.hbm %s1157_s3, 128 }
  0x99   : > { %p767_p5 = scmp.ne.s32.totalorder %s1104_s19, %s766_s15  ;;  %p771_p0 = scmp.lt.u32.totalorder %s1104_s19, %s1157_s3 }
  0x9a   : > { %p772_p11 = scmp.lt.u32.totalorder %s770_s4, %s766_s15  ;;  %p774_p7 = scmp.lt.u32.totalorder %s766_s15, %s1104_s19 }
  0x9b   : > { %p768_p4 = pnand %p767_p5, %p1168_p3 }
  0x9c   : > { %p773_p13 = por %p772_p11, %p771_p0 }
  0x9d   : > { %p769_p8 = pneg %p768_p4 }
  0x9e   : > { %p775_p10 = por %p774_p7, %p773_p13 }
  0xa0   : > { %p776_p12 = pnand %p775_p10, %p769_p8 }
  0xa2   : > { %779 = shalt.err (!%p776_p12)
}
  0xa3   : > { %585 = dma.vmem_to_hbm [thread:$0]  (%p1168_p3), %s1096_s30, 64, %s1104_s19, %s390_s9  }
  0xa4 PF: > { %s430_s6 = sand.u32 1, %s822_s12   ;;  %p1169_p9 = scmp.ne.s32.totalorder %s1163_s27, 0 }
  0xa5   : > { %p1170_p1 = scmp.ge.s32.totalorder %s842_s17, 2  ;;  %s431_s18 = scalar_lea.sflag [#allocation4], %s430_s6 }
  0xa7   : > { %p596_p6 = pnand %p1170_p1, %p1169_p9 }
  0xa9   : > { %813 = dma.done.wait (!%p596_p6), %s431_s18, 64  }
  0xaa   : > { %815 = vsyncadd (!%p596_p6), %s431_s18, 4294967232  ;;  %s440_s7 = scalar_lea.sflag [#allocation9], %s430_s6 }
  0xab   : > { %817 = dma.done.wait (!%p596_p6), %s440_s7, 64  }
  0xac   : > { %819 = vsyncadd (!%p596_p6), %s440_s7, 4294967232  ;;  %s26_s17 = sadd.s32 1, %s842_s17   ;;  %s1171_s12 = smov %s826_s13 }
  0xad   : > { %p23_p2 = scmp.ge.s32.totalorder %s26_s17, 4   ;;  %s1172_s13 = smov %s830_s14 }
  0xae   : > { %s1173_s14 = smov %s928_s26  ;;  %s1174_s15 = smov %s838_s16 }
  0xaf   : > { %s1175_s16 = smov %s1177_s20  ;;  %25 = sbr.rel (!%p23_p2) target bundleno = 10 (0xa), region = 103 }
  0xb6   :  { %445 = vsyncpa [#allocation3], 1 }
  0xb7   :  { %447 = vsyncpa [#allocation3 + $0x1], 1 }
  0xb8   :  { %448 = vsyncpa [#allocation6], 1 }
  0xb9   :  { %450 = vsyncpa [#allocation6 + $0x1], 1 }
  0xba   :  { %451 = vsyncpa [#allocation4], 1 }
  0xbb   :  { %453 = vsyncpa [#allocation4 + $0x1], 1 }
  0xbc   :  { %454 = vsyncpa [#allocation9], 1 }
  0xbd   :  { %456 = vsyncpa [#allocation9 + $0x1], 1 }

</bundles_post_ra>
